<compile_context>
chip_gen: v6e
topology: v6e:2x2x1
jax: 0.10.0
libtpu: 0.0.40
codegen_flags: <defaults>
</compile_context>

<pallas_src>
import jax
import jax.numpy as jnp
import numpy as np
from jax import lax
from jax.experimental import pallas as pl
from jax.experimental.pallas import tpu as pltpu


def _round_up(x, m):
    return ((x + m - 1) // m) * m


def gatconv_kernel(src_col_ref, tgt_row_ref, adj_ref, t_h_ref, bias_ref, out_ref):
    # attention logits for every (source-in-tile, target) pair.
    # tanh(.) ∈ [-1, 1], so exp() can never overflow and softmax is
    # shift-invariant -> no row-max subtraction needed (matches
    # torch.sparse.softmax numerically to well below tolerance).
    logits = jnp.tanh(src_col_ref[...] + tgt_row_ref[...])      # (tile_m, n_tgt_pad)

    # sparse softmax over dim=1: only existing edges participate; rows with no
    # edges stay exactly zero (matches torch.sparse.softmax + torch.sparse.mm).
    edge = adj_ref[...] != 0
    p = jnp.where(edge, jnp.exp(logits), jnp.float32(0.0))
    denom = jnp.sum(p, axis=-1, keepdims=True)
    inv = pl.reciprocal(jnp.maximum(denom, jnp.float32(1e-20)), approx=True)
    att = p * inv

    # attention-weighted sum of target features + output bias (lane-dense store)
    out_ref[...] = jnp.dot(att, t_h_ref[...],
                           preferred_element_type=jnp.float32) + bias_ref[...]


def gatconv_forward(source_x, target_x, edge_list, params, *, tile_m=256):
    w, b_lin, a_src, a_tgt, att_b, bias = params
    n_src, in_feat = source_x.shape
    n_tgt = target_x.shape[0]
    hid = w.shape[1]
    f32 = jnp.float32
    hp = lax.Precision.HIGHEST

    hid_pad = _round_up(hid, 128)
    n_tgt_pad = _round_up(n_tgt, 128)
    tile_m = min(tile_m, _round_up(n_src, 32))
    assert tile_m % 32 == 0, "tile_m must be a multiple of 32 (int8 sublane tile / MXU M)"
    n_src_pad = _round_up(n_src, tile_m)

    # ---- tiny one-time precomputes (plain XLA GEMMs / matvecs, outside kernel) ----
    # target features + target half of the attention logit
    t_h = jnp.dot(target_x, w, precision=hp) + b_lin                  # (n_tgt, hid)
    tgt_att = jnp.dot(t_h, a_tgt[0], precision=hp)                    # (n_tgt,) == t_j·a_tgt
    t_h_pad = jnp.zeros((n_tgt_pad, hid_pad), f32).at[:n_tgt, :hid].set(t_h)
    tgt_row = jnp.zeros((1, n_tgt_pad), f32).at[0, :n_tgt].set(tgt_att)

    # source half of the attention logit: s_i·a_src + b_lin·a_src + att_b.
    # Fold W·a_src once so only a single column per source row enters the kernel.
    wa = jnp.dot(w, a_src[0], precision=hp)                           # (in_feat,)
    src_att = (jnp.dot(source_x, wa, precision=hp)
               + jnp.dot(b_lin[0], a_src[0], precision=hp) + att_b[0, 0])
    src_col = jnp.zeros((n_src_pad, 1), f32).at[:n_src, 0].set(src_att)

    bias_pad = jnp.zeros((1, hid_pad), f32).at[:, :hid].set(bias)

    # int8 dense adjacency (only O(N_src*N_tgt) stream).
    src_idx, tgt_idx = edge_list
    adj = jnp.zeros((n_src_pad, n_tgt_pad), jnp.int8).at[src_idx, tgt_idx].set(1)

    grid = (n_src_pad // tile_m,)
    out = pl.pallas_call(
        gatconv_kernel,
        out_shape=jax.ShapeDtypeStruct((n_src_pad, hid_pad), f32),
        grid=grid,
        in_specs=[
            pl.BlockSpec((tile_m, 1), lambda i: (i, 0)),            # src att column (tiled)
            pl.BlockSpec((1, n_tgt_pad), lambda i: (0, 0)),         # tgt att row  (resident)
            pl.BlockSpec((tile_m, n_tgt_pad), lambda i: (i, 0)),    # adjacency tile (int8)
            pl.BlockSpec((n_tgt_pad, hid_pad), lambda i: (0, 0)),   # t_h          (resident)
            pl.BlockSpec((1, hid_pad), lambda i: (0, 0)),           # out bias     (resident)
        ],
        out_specs=pl.BlockSpec((tile_m, hid_pad), lambda i: (i, 0)),
        compiler_params=pltpu.CompilerParams(
            dimension_semantics=("parallel",),
            vmem_limit_bytes=32 * 1024 * 1024),
    )(src_col, tgt_row, adj, t_h_pad, bias_pad)
    return out[:n_src, :hid]


def gatconv_reference(source_x, target_x, edge_list, params):
    """Pure-JAX edge-list reference mirroring torch's sparse softmax semantics."""
    w, b_lin, a_src, a_tgt, att_b, bias = params
    hp = lax.Precision.HIGHEST
    s_h = jnp.dot(source_x, w, precision=hp) + b_lin
    t_h = jnp.dot(target_x, w, precision=hp) + b_lin
    src_idx, tgt_idx = edge_list
    e = jnp.tanh(jnp.sum(s_h[src_idx] * a_src, axis=-1)
                 + jnp.sum(t_h[tgt_idx] * a_tgt, axis=-1) + att_b[0, 0])
    n_src = source_x.shape[0]
    seg_max = jax.ops.segment_max(e, src_idx, num_segments=n_src)
    seg_max = jnp.where(jnp.isfinite(seg_max), seg_max, 0.0)
    p = jnp.exp(e - seg_max[src_idx])
    denom = jax.ops.segment_sum(p, src_idx, num_segments=n_src)
    att = p / denom[src_idx]
    h = jax.ops.segment_sum(att[:, None] * t_h[tgt_idx], src_idx, num_segments=n_src)
    return h + bias


if __name__ == "__main__":
    key = jax.random.PRNGKey(0)
    n_src, n_tgt, in_feat, hid, n_edges = 48, 24, 32, 32, 120
    ks = jax.random.split(key, 6)

    source_x = jax.random.normal(ks[0], (n_src, in_feat), jnp.float32)
    target_x = jax.random.normal(ks[1], (n_tgt, in_feat), jnp.float32)

    # deterministic edge list without duplicates (duplicates would be deduped by
    # the dense mask but double-counted by a torch-sparse/edge-list formulation)
    flat = jax.random.choice(ks[2], n_src * n_tgt, shape=(n_edges,), replace=False)
    src_idx = (flat // n_tgt).astype(jnp.int32)
    tgt_idx = (flat % n_tgt).astype(jnp.int32)
    edge_list = (src_idx, tgt_idx)

    # parameters (deterministic synthetic init; GATConv.bias reset to 0 as in the module)
    w = 0.1 * jax.random.normal(ks[3], (in_feat, hid), jnp.float32)    # feat_linear.weight.T
    b_lin = 0.1 * jax.random.normal(ks[4], (1, hid), jnp.float32)      # feat_linear.bias
    w_att = 0.1 * jax.random.normal(ks[5], (1, 2 * hid), jnp.float32)  # att.weight
    a_src = w_att[:, :hid]
    a_tgt = w_att[:, hid:]
    att_b = jnp.full((1, 1), 0.05, jnp.float32)                        # att.bias
    bias = jnp.zeros((1, hid), jnp.float32)                            # GATConv.bias (fill_(0))
    params = (w, b_lin, a_src, a_tgt, att_b, bias)

    # tile_m=32 -> padded n_src=64 -> grid=(2,), exercising the multi-tile pipeline
    out = gatconv_forward(source_x, target_x, edge_list, params, tile_m=32)
    out = jax.block_until_ready(out)

    ref = gatconv_reference(source_x, target_x, edge_list, params)
    assert out.shape == (n_src, hid)
    err = float(np.max(np.abs(np.asarray(out) - np.asarray(ref))))
    assert np.allclose(np.asarray(out), np.asarray(ref), atol=2e-3, rtol=2e-3), err
    print("KERNEL_OK")
</pallas_src>

<mosaic_0001>
module attributes {stable_mosaic.version = 11 : i64} {
  func.func @gatconv_kernel(%arg0: i32, %arg1: memref<32x1xf32, #tpu.memory_space<vmem>>, %arg2: memref<1x128xf32, #tpu.memory_space<vmem>>, %arg3: memref<32x128xi8, #tpu.memory_space<vmem>>, %arg4: memref<128x128xf32, #tpu.memory_space<vmem>>, %arg5: memref<1x128xf32, #tpu.memory_space<vmem>>, %arg6: memref<32x128xf32, #tpu.memory_space<vmem>>) attributes {dimension_semantics = [#tpu.dimension_semantics<parallel>], iteration_bounds = array<i64: 2>, scalar_prefetch = 0 : i64, scratch_operands = 0 : i64, tpu.core_type = #tpu.core_type<tc>, window_params = [{transform_indices = @transform_0, window_bounds = array<i64: 32, 1>}, {pipeline_mode = #tpu.pipeline_mode<synchronous>, transform_indices = @transform_1, window_bounds = array<i64: 1, 128>}, {transform_indices = @transform_2, window_bounds = array<i64: 32, 128>}, {pipeline_mode = #tpu.pipeline_mode<synchronous>, transform_indices = @transform_3, window_bounds = array<i64: 128, 128>}, {pipeline_mode = #tpu.pipeline_mode<synchronous>, transform_indices = @transform_4, window_bounds = array<i64: 1, 128>}, {transform_indices = @transform_5, window_bounds = array<i64: 32, 128>}]} {
    %c0 = arith.constant 0 : index
    %c0_0 = arith.constant 0 : index
    %0 = vector.load %arg1[%c0, %c0_0] : memref<32x1xf32, #tpu.memory_space<vmem>>, vector<32x1xf32>
    %c0_1 = arith.constant 0 : index
    %c0_2 = arith.constant 0 : index
    %1 = vector.load %arg2[%c0_1, %c0_2] : memref<1x128xf32, #tpu.memory_space<vmem>>, vector<1x128xf32>
    %2 = vector.broadcast %0 : vector<32x1xf32> to vector<32x128xf32>
    %3 = vector.broadcast %1 : vector<1x128xf32> to vector<32x128xf32>
    %4 = arith.addf %2, %3 : vector<32x128xf32>
    %5 = math.tanh %4 : vector<32x128xf32>
    %c0_3 = arith.constant 0 : index
    %c0_4 = arith.constant 0 : index
    %6 = vector.load %arg3[%c0_3, %c0_4] : memref<32x128xi8, #tpu.memory_space<vmem>>, vector<32x128xi8>
    %c0_i8 = arith.constant 0 : i8
    %7 = vector.broadcast %c0_i8 : i8 to vector<32x128xi8>
    %8 = arith.cmpi ne, %6, %7 : vector<32x128xi8>
    %9 = math.exp %5 : vector<32x128xf32>
    %cst = arith.constant 0.000000e+00 : f32
    %10 = vector.broadcast %cst : f32 to vector<32x128xf32>
    %11 = arith.select %8, %9, %10 : vector<32x128xi1>, vector<32x128xf32>
    %cst_5 = arith.constant dense<0.000000e+00> : vector<32xf32>
    %12 = vector.multi_reduction <add>, %11, %cst_5 [1] : vector<32x128xf32> to vector<32xf32>
    %13 = vector.shape_cast %12 : vector<32xf32> to vector<32x1xf32>
    %cst_6 = arith.constant 9.99999968E-21 : f32
    %14 = vector.broadcast %cst_6 : f32 to vector<32x1xf32>
    %15 = arith.maximumf %13, %14 : vector<32x1xf32>
    %16 = tpu.reciprocal %15 {approx = true} : vector<32x1xf32> -> vector<32x1xf32>
    %17 = vector.broadcast %16 : vector<32x1xf32> to vector<32x128xf32>
    %18 = arith.mulf %11, %17 : vector<32x128xf32>
    %c0_7 = arith.constant 0 : index
    %c0_8 = arith.constant 0 : index
    %19 = vector.load %arg4[%c0_7, %c0_8] : memref<128x128xf32, #tpu.memory_space<vmem>>, vector<128x128xf32>
    %cst_9 = arith.constant dense<0.000000e+00> : vector<32x128xf32>
    %20 = tpu.matmul %18, %19, %cst_9 {dimension_numbers = #tpu.dot_dimension_numbers<[1], [0], [0], [1], [0, 0, 1, 1], [], []>} : vector<32x128xf32>, vector<128x128xf32>, vector<32x128xf32> -> vector<32x128xf32>
    %c0_10 = arith.constant 0 : index
    %c0_11 = arith.constant 0 : index
    %21 = vector.load %arg5[%c0_10, %c0_11] : memref<1x128xf32, #tpu.memory_space<vmem>>, vector<1x128xf32>
    %22 = vector.broadcast %21 : vector<1x128xf32> to vector<32x128xf32>
    %23 = arith.addf %20, %22 : vector<32x128xf32>
    %c0_12 = arith.constant 0 : index
    %c0_13 = arith.constant 0 : index
    %24 = vector.load %arg6[%c0_12, %c0_13] : memref<32x128xf32, #tpu.memory_space<vmem>>, vector<32x128xf32>
    tpu.vector_store %arg6[%c0_12, %c0_13], %23 {strides = array<i32>} : memref<32x128xf32, #tpu.memory_space<vmem>>, vector<32x128xf32>,
    return
  }
  func.func @transform_0(%arg0: i32) -> (i32, i32) {
    %c0_i32 = arith.constant 0 : i32
    %c0_i32_0 = arith.constant 0 : i32
    return %arg0, %c0_i32 : i32, i32
  }
  func.func @transform_1(%arg0: i32) -> (i32, i32) {
    %c0_i32 = arith.constant 0 : i32
    %c0_i32_0 = arith.constant 0 : i32
    %c0_i32_1 = arith.constant 0 : i32
    return %c0_i32, %c0_i32_0 : i32, i32
  }
  func.func @transform_2(%arg0: i32) -> (i32, i32) {
    %c0_i32 = arith.constant 0 : i32
    %c0_i32_0 = arith.constant 0 : i32
    return %arg0, %c0_i32 : i32, i32
  }
  func.func @transform_3(%arg0: i32) -> (i32, i32) {
    %c0_i32 = arith.constant 0 : i32
    %c0_i32_0 = arith.constant 0 : i32
    %c0_i32_1 = arith.constant 0 : i32
    return %c0_i32, %c0_i32_0 : i32, i32
  }
  func.func @transform_4(%arg0: i32) -> (i32, i32) {
    %c0_i32 = arith.constant 0 : i32
    %c0_i32_0 = arith.constant 0 : i32
    %c0_i32_1 = arith.constant 0 : i32
    return %c0_i32, %c0_i32_0 : i32, i32
  }
  func.func @transform_5(%arg0: i32) -> (i32, i32) {
    %c0_i32 = arith.constant 0 : i32
    %c0_i32_0 = arith.constant 0 : i32
    return %arg0, %c0_i32 : i32, i32
  }
}

</mosaic_0001>

<bundles_post_ra>
// kernel: tpu_custom_call.1
= control target key start
LH: loop header
LB: loop body
LE: loop exit
PB: predicated region body
PF: predicated region fallthrough
CT: control target
= control target key end

     0   :  { %10 = vsyncpa [#allocation3], 0  ;;  %s1045_s0 = inlined_call_operand.vmem [shape: f32[64,1], index: 0, kind: input, shape index: {}]   ;;  %s1046_s1 = inlined_call_operand.vmem [shape: f32[1,128], index: 1, kind: input, shape index: {}]   ;;  %s1047_s2 = inlined_call_operand.vmem [shape: s8[64,128], index: 2, kind: input, shape index: {}]   ;;  %s1048_s3 = inlined_call_operand.hbm [shape: f32[128,128], index: 3, kind: input, shape index: {}]   ;;  %s1049_s4 = inlined_call_operand.vmem [shape: f32[1,128], index: 4, kind: input, shape index: {}]   ;;  %s1050_s5 = inlined_call_operand.hbm [shape: f32[64,128], index: 5, kind: output, shape index: {}]  }
   0x1   :  { %11 = vsyncpa [#allocation4], 0 }
   0x2   :  { %13 = vsyncpa [#allocation4 + $0x1], 0  ;;  %s892_s18 = smov 0   ;;  %s894_s19 = smov 0  }
   0x3   :  { %s896_s20 = smov 0   ;;  %s898_s21 = smov 0  }
   0x4 LB: > { %s913_s22 = sadd.s32 4294967295, %s853_s21   ;;  %s574_s23 = sadd.s32 4294967294, %s853_s21   ;;  %s853_s21 = sphi %s898_s21, %s1058_s21   ;;  %s849_s20 = sphi %s896_s20, %s1057_s20   ;;  %s845_s19 = sphi %s894_s19, %s1056_s19   ;;  %s841_s18 = sphi %s892_s18, %s1055_s18  }
   0x5   : > { %s917_s24 = sadd.s32 1, %s853_s21   ;;  %s141_s25 = sadd.s32 1, %s849_s20 }
   0x6   : > { %s138_s26 = ssub.s32 %s853_s21, %s917_s24  ;;  %p151_p0 = scmp.ne.s32.totalorder %s849_s20, %s845_s19 }
   0x7   : > { %p139_p1 = scmp.eq.s32.totalorder %s138_s26, 0  ;;  %p152_p2 = scmp.eq.s32.totalorder %s913_s22, 1 }
   0x8   : > { %p157_p3 = scmp.ne.s32.totalorder %s845_s19, %s841_s18  ;;  %p158_p4 = scmp.eq.s32.totalorder %s574_s23, 1 }
   0x9   : > { %s928_s27 = scalar_select %p139_p1, %s849_s20, %s141_s25  }
   0xa   : > { %p930_p5 = por %p152_p2, %p151_p0  ;;  %p934_p6 = por %p158_p4, %p157_p3 }
   0xb   : > { %p575_p7 = scmp.ge.s32.totalorder %s853_s21, 1  ;;  %p165_p8 = scmp.lt.s32.totalorder %s853_s21, 3 }
   0xc   : > { %s1052_s29 = scalar_select %p934_p6, 1, 0 }
   0xd   : > { %p696_p9 = scmp.eq.s32.totalorder %s913_s22, 0  ;;  %p941_p10 = pnand %p575_p7, %p165_p8 }
   0xe   : > { %s855_s6 = smov [#allocation2]  }
   0xf   : > { %s180_s7 = sshll.u32 %s855_s6, 4  ;;  %p688_p11 = pneg %p941_p10  ;;  %s181_s7 = int_to_ptr.vmem [resolvable:$true] %s180_s7 }
  0x10   : > { %s774_s8 = scalar_lea.vmem %s181_s7, 2048  ;;  %p782_p3 = scmp.lt.s32.totalorder %s181_s7, %s181_s7 }
  0x11   : > { %p689_p12 = pnand %p696_p9, %p688_p11  ;;  %p775_p0 = scmp.ne.s32.totalorder %s181_s7, %s774_s8 }
  0x12   : > { %p783_p4 = scmp.lt.s32.totalorder %s774_s8, %s774_s8 }
  0x13   : > { %p765_p13 = pneg %p689_p12 }
  0x14   : > { %p784_p6 = por %p783_p4, %p782_p3 }
  0x15   : > { %p777_p1 = pnand %p775_p0, %p765_p13 }
  0x17   : > { %p778_p2 = pneg %p777_p1 }
  0x19   : > { %p785_p7 = pnand %p784_p6, %p778_p2 }
  0x1b   : > { %788 = shalt.err (!%p785_p7)
}
  0x1c   : > { %s856_s9 = smov 128   ;;  %s857_s10 = smov 8  }
  0x1d   : > { %691 = dma.hbm_to_vmem [thread:$0]  (!%p689_p12), %s1048_s3, 2048, %s181_s7, [#allocation3], %s856_s9, %s856_s9, %s857_s10  }
  0x1e   : > { %215 = sbr.rel (%p941_p10) target bundleno = 576 (0x240), region = 40 }
  0x23   : > { %832 = dma.done.wait (%p696_p9), [#allocation3], 2048  }
  0x24   : > { %834 = vsyncadd (%p696_p9), [#allocation3], 4294965248  ;;  %s581_s13 = sshll.u32 %s913_s22, 2  ;;  %v858_v0 = vmov 0   ;;  %v377_v5 = vld [vmem:[#allocation2 + $0x78] sm:$0xff]  ;;  %v376_v6 = vld [vmem:[#allocation2 + $0x70] sm:$0xff] }
  0x25   : > { %738 = vset.pattern.permute.xlu1 %v858_v0  ;;  %737 = vset.pattern.permute.xlu0 %v858_v0  ;;  %p248_p6 = scmp.lt.s32.totalorder %s581_s13, 7  ;;  %v375_v7 = vld [vmem:[#allocation2 + $0x68] sm:$0xff]  ;;  %v374_v8 = vld [vmem:[#allocation2 + $0x60] sm:$0xff]  ;;  %v373_v9 = vld [vmem:[#allocation2 + $0x58] sm:$0xff]  ;;  %p253_p8 = scmp.lt.s32.totalorder %s913_s22, 1 }
  0x26   : > { %612 = vmatprep.subr.mxu0 %v377_v5  ;;  %650 = vmatprep.subr.mxu1 %v377_v5  ;;  %v584_v10 = vld [vmem:[%s1046_s1] ss:$0 sm:$0xff]  ;;  %v372_v57 = vld [vmem:[#allocation2 + $0x50] sm:$0xff]  ;;  %v371_v58 = vld [vmem:[#allocation2 + $0x48] sm:$0xff]  ;;  %s244_s9 = sand.u32 1, %s845_s19   ;;  %s591_s15 = sshll.u32 %s913_s22, 9 }
  0x27   : > { %s1060_s13 = smov (!%p248_p6, %s581_s13), 7  ;;  %613 = vmatpush3.msra.mxu0 %v377_v5  ;;  %666 = vmatpush3.msra.mxu1 %v377_v5  ;;  %v370_v59 = vld [vmem:[#allocation2 + $0x40] sm:$0xff]  ;;  %v369_v60 = vld [vmem:[#allocation2 + $0x38] sm:$0xff]  ;;  %v368_v61 = vld [vmem:[#allocation2 + $0x30] sm:$0xff]  ;;  %s580_s10 = sshll.u32 %s244_s9, 5 }
  0x28   : > { %s582_s14 = sshll.u32 %s1060_s13, 3  ;;  %614 = vmatprep.subr.mxu0 %v376_v6  ;;  %651 = vmatprep.subr.mxu1 %v376_v6  ;;  %v367_v62 = vld [vmem:[#allocation2 + $0x28] sm:$0xff]  ;;  %v366_v63 = vld [vmem:[#allocation2 + $0x20] sm:$0xff]  ;;  %s246_s13 = scalar_lea.vmem [#allocation5], %s580_s10 }
  0x29   : > { %s251_s17 = scalar_lea.vmem %s1045_s0, %s582_s14  ;;  %615 = vmatpush3.msra.mxu0 %v376_v6  ;;  %667 = vmatpush3.msra.mxu1 %v376_v6  ;;  %s488_s14 = sshll.u32 %s246_s13, 4  ;;  %s998_s14 = int_to_ptr.vmem [resolvable:$true] %s488_s14 }
  0x2a   : > { %v261_v1 = vld [vmem:[%s251_s17 + $0x8] sm:$0xff]  ;;  %v260_v2 = vld [vmem:[%s251_s17] sm:$0xff]  ;;  %v263_v3 = vld [vmem:[%s251_s17 + $0x18] sm:$0xff]  ;;  %616 = vmatprep.subr.mxu0 %v375_v7  ;;  %652 = vmatprep.subr.mxu1 %v375_v7  ;;  %s254_s23 = scalar_select %p253_p8, %s913_s22, 1 }
  0x2b   : > { %272 = vperm.xlu1 %738, %v261_v1   ;;  %267 = vperm.xlu0 %737, %v260_v2   ;;  %v262_v4 = vld [vmem:[%s251_s17 + $0x10] sm:$0xff]  ;;  %v363_v2 = vld [vmem:[#allocation2 + $0x8] sm:$0xff]  ;;  %s789_s26 = scalar_lea.vmem %s998_s14, 512  ;;  %s859_s22 = smov [#allocation5]  }
  0x2c   : > { %617 = vmatpush3.msra.mxu0 %v375_v7  ;;  %668 = vmatpush3.msra.mxu1 %v375_v7  ;;  %s583_s25 = sshll.u32 %s254_s23, 3  ;;  %v364_v1 = vld [vmem:[#allocation2 + $0x10] sm:$0xff]  ;;  %s1003_s23 = scalar_lea.hbm %s1050_s5, %s591_s15 }
  0x2d   : > { %618 = vmatprep.subr.mxu0 %v374_v8  ;;  %653 = vmatprep.subr.mxu1 %v374_v8  ;;  %s256_s6 = scalar_lea.vmem %s1047_s2, %s583_s25  ;;  %s1005_s25 = scalar_lea.sflag [#allocation4], %s244_s9 }
  0x2e   : > { %619 = vmatpush3.msra.mxu0 %v374_v8  ;;  %669 = vmatpush3.msra.mxu1 %v374_v8  ;;  %v299_v13 = vld [vmem:[%s256_s6] sm:$0xff]  ;;  %p790_p9 = scmp.ne.s32.totalorder %s998_s14, %s789_s26  ;;  %s793_s30 = sshll.u32 %s859_s22, 4  ;;  %s794_s30 = int_to_ptr.vmem [resolvable:$false] %s793_s30 }
  0x2f   : > { %282 = vperm.xlu1 %738, %v263_v3   ;;  %277 = vperm.xlu0 %737, %v262_v4   ;;  %vm300_vm0 = vnez %v299_v13  ;;  %v362_v3 = vld [vmem:[#allocation2] sm:$0xff]  ;;  %s795_s6 = scalar_lea.vmem %s794_s30, 1024  ;;  %p796_p12 = scmp.lt.s32.totalorder %s998_s14, %s794_s30 }
  0x30   : > { %620 = vmatprep.subr.mxu0 %v373_v9  ;;  %654 = vmatprep.subr.mxu1 %v373_v9  ;;  %v309_v20 = vsel %vm300_vm0, 16843009, %v858_v0  ;;  %p791_p10 = pnand %p790_p9, %p930_p5  ;;  %p797_p13 = scmp.lt.s32.totalorder %s795_s6, %s789_s26 }
  0x31   : > { %621 = vmatpush3.msra.mxu0 %v373_v9  ;;  %670 = vmatpush3.msra.mxu1 %v373_v9  ;;  %v310_v21 = vunpack.c.0.s8 %v309_v20  ;;  %v311_v22 = vunpack.c.1.s8 %v309_v20  ;;  %v312_v24 = vunpack.c.2.s8 %v309_v20  ;;  %v313_v31 = vunpack.c.3.s8 %v309_v20  ;;  %v585_v20 = vld [vmem:[%s1049_s4] ss:$0 sm:$0xff] }
  0x32   : > { %622 = vmatprep.subr.mxu0 %v372_v57  ;;  %655 = vmatprep.subr.mxu1 %v372_v57  ;;  %p792_p11 = pneg %p791_p10  ;;  %p798_p0 = por %p797_p13, %p796_p12 }
  0x33   : > { %v314_v23 = vpack.c.b16 %v310_v21, %v310_v21  ;;  %v316_v25 = vpack.c.b16 %v311_v22, %v311_v22  ;;  %v318_v30 = vpack.c.b16 %v312_v24, %v312_v24  ;;  %v320_v37 = vpack.c.b16 %v313_v31, %v313_v31  ;;  %623 = vmatpush3.msra.mxu0 %v372_v57 }
  0x34   : > { %671 = vmatpush3.msra.mxu1 %v372_v57  ;;  %624 = vmatprep.subr.mxu0 %v371_v58  ;;  %p799_p1 = pnand %p798_p0, %p792_p11 }
  0x35   : > { %v315_v29 = vpack.c.b8 %v314_v23, %v314_v23  ;;  %v317_v33 = vpack.c.b8 %v316_v25, %v316_v25  ;;  %v319_v36 = vpack.c.b8 %v318_v30, %v318_v30  ;;  %v321_v41 = vpack.c.b8 %v320_v37, %v320_v37  ;;  %656 = vmatprep.subr.mxu1 %v371_v58 }
  0x36   : > { %625 = vmatpush3.msra.mxu0 %v371_v58  ;;  %672 = vmatpush3.msra.mxu1 %v371_v58 }
  0x37   : > { %vm322_vm1 = vnez %v315_v29  ;;  %vm323_vm2 = vnez %v317_v33  ;;  %vm324_vm3 = vnez %v319_v36  ;;  %vm325_vm4 = vnez %v321_v41  ;;  %626 = vmatprep.subr.mxu0 %v370_v59  ;;  %657 = vmatprep.subr.mxu1 %v370_v59 }
  0x38   : > { %v326_v40 = vsel %vm322_vm1, 16843009, %v858_v0  ;;  %v327_v42 = vsel %vm323_vm2, 16843009, %v858_v0  ;;  %v328_v44 = vsel %vm324_vm3, 16843009, %v858_v0  ;;  %627 = vmatpush3.msra.mxu0 %v370_v59  ;;  %673 = vmatpush3.msra.mxu1 %v370_v59 }
  0x39   : > { %v330_v43 = vunpack.c.0.s8 %v326_v40  ;;  %v331_v45 = vunpack.c.0.s8 %v327_v42  ;;  %v332_v46 = vunpack.c.0.s8 %v328_v44  ;;  %v329_v48 = vsel %vm325_vm4, 16843009, %v858_v0  ;;  %628 = vmatprep.subr.mxu0 %v369_v60  ;;  %658 = vmatprep.subr.mxu1 %v369_v60  ;;  %v365_v0 = vld [vmem:[#allocation2 + $0x18] sm:$0xff] }
  0x3a   : > { %v333_v51 = vunpack.c.0.s8 %v329_v48  ;;  %629 = vmatpush3.msra.mxu0 %v369_v60  ;;  %674 = vmatpush3.msra.mxu1 %v369_v60 }
  0x3b   : > { %vm334_vm5 = vcmp.ne.s32.totalorder %v330_v43, 0  ;;  %vm335_vm6 = vcmp.ne.s32.totalorder %v331_v45, 0  ;;  %vm336_vm7 = vcmp.ne.s32.totalorder %v332_v46, 0  ;;  %630 = vmatprep.subr.mxu0 %v368_v61  ;;  %659 = vmatprep.subr.mxu1 %v368_v61 }
  0x3c   : > { %vm337_vm8 = vcmp.ne.s32.totalorder %v333_v51, 0  ;;  %631 = vmatpush3.msra.mxu0 %v368_v61  ;;  %675 = vmatpush3.msra.mxu1 %v368_v61 }
  0x3d   : > { %632 = vmatprep.subr.mxu0 %v367_v62  ;;  %660 = vmatprep.subr.mxu1 %v367_v62 }
  0x3e   : > { %633 = vmatpush3.msra.mxu0 %v367_v62  ;;  %676 = vmatpush3.msra.mxu1 %v367_v62 }
  0x3f   : > { %634 = vmatprep.subr.mxu0 %v366_v63  ;;  %661 = vmatprep.subr.mxu1 %v366_v63 }
  0x40   : > { %635 = vmatpush3.msra.mxu0 %v366_v63  ;;  %677 = vmatpush3.msra.mxu1 %v366_v63 }
  0x41   : > { %636 = vmatprep.subr.mxu0 %v365_v0  ;;  %662 = vmatprep.subr.mxu1 %v365_v0 }
  0x42   : > { %637 = vmatpush3.msra.mxu0 %v365_v0  ;;  %678 = vmatpush3.msra.mxu1 %v365_v0 }
  0x43   : > { %638 = vmatprep.subr.mxu0 %v364_v1  ;;  %663 = vmatprep.subr.mxu1 %v364_v1 }
  0x44   : > { %639 = vmatpush3.msra.mxu0 %v364_v1  ;;  %679 = vmatpush3.msra.mxu1 %v364_v1 }
  0x45   : > { %640 = vmatprep.subr.mxu0 %v363_v2  ;;  %664 = vmatprep.subr.mxu1 %v363_v2 }
  0x46   : > { %641 = vmatpush3.msra.mxu0 %v363_v2  ;;  %680 = vmatpush3.msra.mxu1 %v363_v2 }
  0x47   : > { %642 = vmatprep.subr.mxu0 %v362_v3  ;;  %665 = vmatprep.subr.mxu1 %v362_v3 }
  0x48   : > { %643 = vmatpush3.msra.mxu0 %v362_v3  ;;  %681 = vmatpush3.msra.mxu1 %v362_v3 }
  0xa6   : > { %v273_v11 = vpop.permute.xlu1 %272  ;;  %v268_v12 = vpop.permute.xlu0 %267 }
  0xa7   : > { %v292_v14 = vadd.f32 %v584_v10, %v273_v11  ;;  %v291_v15 = vadd.f32 %v584_v10, %v268_v12 }
  0xa9   : > { %739 = vtanh.f32 %v292_v14 }
  0xaa   : > { %741 = vtanh.f32 %v291_v15  ;;  %v283_v16 = vpop.permute.xlu1 %282  ;;  %v278_v17 = vpop.permute.xlu0 %277 }
  0xab   : > { %v294_v18 = vadd.f32 %v584_v10, %v283_v16  ;;  %v293_v19 = vadd.f32 %v584_v10, %v278_v17 }
  0xad   : > { %743 = vtanh.f32 %v294_v18 }
  0xae   : > { %745 = vtanh.f32 %v293_v19 }
  0xb6   : > { %v740_v26 = vpop.eup %739 }
  0xb7   : > { %v742_v27 = vpop.eup %741  ;;  %v303_v28 = vmul.f32 1.442695, %v740_v26 }
  0xb8   : > { %v301_v32 = vmul.f32 1.442695, %v742_v27 }
  0xb9   : > { %747 = vpow2.f32 %v303_v28 }
  0xba   : > { %v744_v34 = vpop.eup %743  ;;  %749 = vpow2.f32 %v301_v32 }
  0xbb   : > { %v746_v35 = vpop.eup %745  ;;  %v307_v38 = vmul.f32 1.442695, %v744_v34 }
  0xbc   : > { %v305_v39 = vmul.f32 1.442695, %v746_v35 }
  0xbe   : > { %751 = vpow2.f32 %v305_v39 }
  0xbf   : > { %753 = vpow2.f32 %v307_v38 }
  0xc6   : > { %v748_v47 = vpop.eup %747 }
  0xc7   : > { %v750_v49 = vpop.eup %749  ;;  %v980_v52 = vsel %vm335_vm6, %v748_v47, 0.0 }
  0xc8   : > { %v977_v50 = vsel %vm334_vm5, %v750_v49, 0.0 }
  0xc9   : > { %342 = vadd.xlane.f32.xlu0 %v977_v50 }
  0xcb   : > { %v752_v53 = vpop.eup %751 }
  0xcc   : > { %v982_v54 = vsel %vm336_vm7, %v752_v53, 0.0  ;;  %v754_v55 = vpop.eup %753 }
  0xcd   : > { %344 = vadd.xlane.f32.xlu0 %v980_v52  ;;  %346 = vadd.xlane.f32.xlu1 %v982_v54  ;;  %v986_v56 = vsel %vm337_vm8, %v754_v55, 0.0 }
  0xd1   : > { %348 = vadd.xlane.f32.xlu0 %v986_v56 }
 0x152   : > { %v343_v4 = vpop.xlane.xlu0 %342 }
 0x153   : > { %v350_v5 = vmax.f32 %v343_v4, 1e-20 }
 0x155   : > { %755 = vrcp.f32 %v350_v5 }
 0x156   : > { %v347_v6 = vpop.xlane.xlu1 %346  ;;  %v345_v7 = vpop.xlane.xlu0 %344 }
 0x157   : > { %v352_v8 = vmax.f32 %v347_v6, 1e-20  ;;  %v351_v9 = vmax.f32 %v345_v7, 1e-20 }
 0x159   : > { %757 = vrcp.f32 %v352_v8 }
 0x15a   : > { %759 = vrcp.f32 %v351_v9  ;;  %v349_v10 = vpop.xlane.xlu0 %348 }
 0x15b   : > { %v353_v11 = vmax.f32 %v349_v10, 1e-20 }
 0x15d   : > { %761 = vrcp.f32 %v353_v11 }
 0x162   : > { %v756_v12 = vpop.eup %755 }
 0x163   : > { %v358_v13 = vmul.f32 %v756_v12, %v977_v50 }
 0x165   : > { %644 = vmatprep.mubr.f32.mxu0 %v358_v13 }
 0x166   : > { %v758_v14 = vpop.eup %757 }
 0x167   : > { %v760_v15 = vpop.eup %759  ;;  %v360_v16 = vmul.f32 %v758_v14, %v982_v54 }
 0x168   : > { %v359_v17 = vmul.f32 %v760_v15, %v980_v52 }
 0x169   : > { %647 = vmatprep.mubr.f32.mxu1 %v360_v16 }
 0x16a   : > { %v762_v18 = vpop.eup %761  ;;  %645 = vmatmul.mubr.f32.vlgmr.msra.gmra.mxu0 %v359_v17 }
 0x16b   : > { %v361_v19 = vmul.f32 %v762_v18, %v986_v56 }
 0x16d   : > { %648 = vmatmul.mubr.f32.vlgmr.msra.gmra.mxu1 %v361_v19 }
 0x22a   : > { %v646_v21 = vpop.f32.mrf.mxu0 }
 0x22b   : > { %v457_v22 = vadd.f32 %v646_v21, %v585_v20 }
 0x22c   : > { %v451_v23 = vpop.f32.mrf.mxu0 }
 0x22d   : > { %471 = vst [vmem:[%s246_s13 + $0x8] sm:$0xff] %v457_v22  ;;  %v452_v24 = vadd.f32 %v585_v20, %v451_v23  ;;  %v649_v25 = vpop.f32.mrf.mxu1 }
 0x22e   : > { %v467_v26 = vadd.f32 %v649_v25, %v585_v20 }
 0x22f   : > { %470 = vst [vmem:[%s246_s13] sm:$0xff] %v452_v24  ;;  %v461_v27 = vpop.f32.mrf.mxu1 }
 0x230   : > { %473 = vst [vmem:[%s246_s13 + $0x18] sm:$0xff] %v467_v26  ;;  %v462_v28 = vadd.f32 %v585_v20, %v461_v27 }
 0x232   : > { %472 = vst [vmem:[%s246_s13 + $0x10] sm:$0xff] %v462_v28 }
 0x233   : > { %802 = shalt.err (!%p799_p1)
}
 0x234   : > { %s803_s7 = scalar_lea.hbm %s1003_s23, 512  ;;  %s807_s10 = scalar_lea.hbm %s1050_s5, 1024 }
 0x235   : > { %p804_p2 = scmp.ne.s32.totalorder %s1003_s23, %s803_s7  ;;  %p808_p7 = scmp.lt.s32.totalorder %s1003_s23, %s1050_s5 }
 0x236   : > { %p809_p6 = scmp.lt.s32.totalorder %s807_s10, %s803_s7 }
 0x237   : > { %p805_p3 = pnand %p804_p2, %p930_p5 }
 0x238   : > { %p810_p8 = por %p809_p6, %p808_p7 }
 0x239   : > { %p806_p4 = pneg %p805_p3 }
 0x23b   : > { %p811_p9 = pnand %p810_p8, %p806_p4 }
 0x23d   : > { %814 = shalt.err (!%p811_p9)
}
 0x23e   : > { %s860_s13 = smov 128   ;;  %s861_s15 = smov 8  }
 0x23f   : > { %686 = dma.vmem_to_hbm [thread:$0]  (%p930_p5), %s998_s14, 512, %s1003_s23, %s1005_s25, %s860_s13, %s860_s13, %s861_s15  }
 0x240 PF: > { %p698_p10 = scmp.ge.s32.totalorder %s853_s21, 2  ;;  %s503_s16 = sand.u32 1, %s841_s18  }
 0x241   : > { %p1054_p11 = scmp.ne.s32.totalorder %s1052_s29, 0  ;;  %s504_s17 = scalar_lea.sflag [#allocation4], %s503_s16 }
 0x243   : > { %p693_p12 = pnand %p698_p10, %p1054_p11 }
 0x245   : > { %p694_p13 = pneg %p693_p12 }
 0x247   : > { %836 = dma.done.wait (%p694_p13), %s504_s17, 512  }
 0x248   : > { %838 = vsyncadd (%p694_p13), %s504_s17, 4294966784  ;;  %p16_p0 = scmp.ge.s32.totalorder %s917_s24, 4   ;;  %s1055_s18 = smov %s845_s19 }
 0x249   : > { %s1056_s19 = smov %s849_s20  ;;  %s1057_s20 = smov %s928_s27 }
 0x24a   : > { %s1058_s21 = smov %s917_s24  ;;  %18 = sbr.rel (!%p16_p0) target bundleno = 4 (0x4), region = 83 }
 0x24f   :  { %509 = vsyncpa [#allocation3], 1 }
 0x250   :  { %511 = vsyncpa [#allocation3 + $0x1], 1 }
 0x251   :  { %512 = vsyncpa [#allocation4], 1 }
 0x252   :  { %514 = vsyncpa [#allocation4 + $0x1], 1 }

</bundles_post_ra>
